<compile_context>
chip_gen: v6e
topology: v6e:2x2x1
jax: 0.10.0
libtpu: 0.0.40
codegen_flags: <defaults>
</compile_context>

<pallas_src>
import functools
import math

import jax
import jax.numpy as jnp
from jax.experimental import pallas as pl
from jax.experimental.pallas import tpu as pltpu


def _round_up(x, m):
    return (x + m - 1) // m * m


def decoder_kernel(x_ref, w1_ref, b1_ref, w2_ref, b2_ref, out_ref, acc_ref, *, inv_t):
    """One (batch-tile, seq-chunk) grid step.

    x_ref  : (Tt, bb, fE)   lane-dense folded sequence chunk
    w1_ref : (fE, H)        first Linear, tiled f times along its input dim
    b1_ref : (1, H)
    w2_ref : (H, O_pad)     second Linear, lane-padded output dim
    b2_ref : (1, O_pad)
    out_ref: (bb, O_pad)
    acc_ref: (bb, fE) f32   running sequence sum for this batch tile
    """
    t = pl.program_id(1)

    @pl.when(t == 0)
    def _init():
        acc_ref[...] = jnp.zeros_like(acc_ref)

    # f32-accumulated partial sum over this sequence chunk (lane-dense VALU).
    acc_ref[...] += jnp.sum(x_ref[...], axis=0, dtype=jnp.float32)

    @pl.when(t == pl.num_programs(1) - 1)
    def _finalize():
        # mean = sum * (1/T)  (constant VALU multiply, not an EUP divide).
        # Cast to the weight dtype so bf16 weights take a bf16 MXU pass; the
        # accumulate stays f32 via preferred_element_type.
        xm = (acc_ref[...] * inv_t).astype(w1_ref.dtype)
        h = jnp.dot(xm, w1_ref[...], preferred_element_type=jnp.float32) + b1_ref[...]
        h = jnp.maximum(h, 0.0)                                 # ReLU (f32 VPU)
        o = jnp.dot(h.astype(w2_ref.dtype), w2_ref[...],
                    preferred_element_type=jnp.float32) + b2_ref[...]
        out_ref[...] = o.astype(out_ref.dtype)                  # lane-dense vst


def linear_model_decoder(x, w1, b1, w2, b2, emsize, n_out, *,
                         batch_block=256, seq_block=128, x_buffer_count=2,
                         weight_dtype=None, vmem_budget_bytes=40 * 2**20):
    """x: (T, B, E); weights stored pre-transposed as [in, out]."""
    T, B, E = x.shape
    H = w1.shape[1]
    out_feat = (emsize + 1) * n_out
    assert E == emsize and w1.shape[0] == E and w2.shape == (H, out_feat)

    # Optional weight down-cast (halves weight VMEM/DMA; full-rate MXU bf16).
    if weight_dtype is not None:
        w1, b1, w2, b2 = (a.astype(weight_dtype) for a in (w1, b1, w2, b2))
    out_dtype = jnp.promote_types(x.dtype, w2.dtype)

    # 1) Lane-align the second matmul's N dim / output slab (e.g. 330 -> 384).
    out_pad = _round_up(out_feat, 128)
    if out_pad != out_feat:
        w2 = jnp.pad(w2, ((0, 0), (0, out_pad - out_feat)))
        b2 = jnp.pad(b2, ((0, 0), (0, out_pad - out_feat)))

    # 2) Lane-dense x: fold f sequence steps into the lane dim when E is a
    #    sub-multiple of 128.  The cross-segment sum is folded into w1 by
    #    tiling it f times along its input dim.
    f = 128 // math.gcd(E, 128)
    if f > 1 and f <= min(T, 32):
        t_pad = _round_up(T, f)
        if t_pad != T:  # zero rows contribute nothing to the sum
            x = jnp.pad(x, ((0, t_pad - T), (0, 0), (0, 0)))
        x = (x.reshape(t_pad // f, f, B, E)
              .transpose(0, 2, 1, 3)
              .reshape(t_pad // f, B, f * E))
        w1 = jnp.tile(w1, (f, 1))                     # (f*E, H)
    else:
        f = 1
    Tf = x.shape[0]
    fE = f * E

    # 3) Tile sizes.  Batch tile 256 by default; for moderate B split in two
    #    so the "parallel" batch axis has >=2 steps (v7x megacore).
    if B > batch_block:
        bb = batch_block
    elif B > 8:
        bb = max(8, _round_up((B + 1) // 2, 8))
    else:
        bb = 8
    t_block = max(1, min(Tf, seq_block // f))

    # 4) VMEM budget (keeps us inside v7x's 64 MiB physical VMEM w/ headroom).
    def vmem_estimate(tb, bbv):
        x_buf = x_buffer_count * tb * bbv * fE * x.dtype.itemsize
        w_buf = (fE * H + H + H * out_pad + out_pad) * w2.dtype.itemsize  # Buffered(1)
        o_buf = 2 * bbv * out_pad * jnp.dtype(out_dtype).itemsize
        a_buf = bbv * fE * 4
        return x_buf + w_buf + o_buf + a_buf

    while vmem_estimate(t_block, bb) > vmem_budget_bytes:
        if t_block > 1:
            t_block = max(1, t_block // 2)
        elif bb > 8:
            bb = max(8, _round_up(bb // 2, 8))
        else:
            break
    # TODO(synk): if w2 alone exceeds the budget (very large hidden/out_feat),
    # add a third "parallel" grid axis over out_pad so only an (H, tile_N)
    # slice of w2 is VMEM-resident.

    # 5) Pad batch / folded-seq axes to the tile sizes (zero seq rows add
    #    nothing to the sum; padded batch rows are sliced off below).
    b_pad = _round_up(B, bb)
    tf_pad = _round_up(Tf, t_block)
    if b_pad != B or tf_pad != Tf:
        x = jnp.pad(x, ((0, tf_pad - Tf), (0, b_pad - B), (0, 0)))

    grid = (b_pad // bb, tf_pad // t_block)
    vmem_limit = int(min(max(vmem_estimate(t_block, bb) * 1.25, 32 * 2**20),
                         128 * 2**20))

    flat = pl.pallas_call(
        functools.partial(decoder_kernel, inv_t=1.0 / T),
        out_shape=jax.ShapeDtypeStruct((b_pad, out_pad), out_dtype),
        grid_spec=pltpu.PrefetchScalarGridSpec(
            num_scalar_prefetch=0,
            grid=grid,
            in_specs=[
                # x: one (seq-chunk, batch-tile) block per step, pipelined.
                pl.BlockSpec((t_block, bb, fE), lambda i, t: (t, i, 0),
                             pipeline_mode=pl.Buffered(buffer_count=x_buffer_count)),
                # Weights/biases: constant index_map + single buffer -> fetched
                # once, VMEM-resident, no wasted double buffer.
                pl.BlockSpec((fE, H), lambda i, t: (0, 0),
                             pipeline_mode=pl.Buffered(buffer_count=1)),
                pl.BlockSpec((1, H), lambda i, t: (0, 0),
                             pipeline_mode=pl.Buffered(buffer_count=1)),
                pl.BlockSpec((H, out_pad), lambda i, t: (0, 0),
                             pipeline_mode=pl.Buffered(buffer_count=1)),
                pl.BlockSpec((1, out_pad), lambda i, t: (0, 0),
                             pipeline_mode=pl.Buffered(buffer_count=1)),
            ],
            out_specs=pl.BlockSpec((bb, out_pad), lambda i, t: (i, 0)),
            scratch_shapes=[pltpu.VMEM((bb, fE), jnp.float32)],
        ),
        compiler_params=pltpu.CompilerParams(
            # Batch tiles are independent ("parallel" -> v7x megacore); the
            # sequence-chunk axis carries the accumulator ("arbitrary", last).
            dimension_semantics=("parallel", "arbitrary"),
            vmem_limit_bytes=vmem_limit,
        ),
    )(x, w1, b1, w2, b2)

    # Drop batch / lane padding, then the pure-glue reshape.
    return flat[:B, :out_feat].reshape(-1, emsize + 1, n_out)


if __name__ == "__main__":
    # Small shapes consistent with the module.
    seq, batch = 8, 4
    emsize, hidden_size, n_out = 32, 64, 10
    out_feat = (emsize + 1) * n_out  # 330

    key = jax.random.PRNGKey(0)
    kx, k1, k2, k3, k4 = jax.random.split(key, 5)

    x = jax.random.normal(kx, (seq, batch, emsize), dtype=jnp.float32)

    # Deterministic parameter init (weights stored as [in, out], i.e. W.T).
    w1 = jax.random.normal(k1, (emsize, hidden_size), dtype=jnp.float32) * 0.05
    b1 = jax.random.normal(k2, (1, hidden_size), dtype=jnp.float32) * 0.05
    w2 = jax.random.normal(k3, (hidden_size, out_feat), dtype=jnp.float32) * 0.05
    b2 = jax.random.normal(k4, (1, out_feat), dtype=jnp.float32) * 0.05

    out = linear_model_decoder(x, w1, b1, w2, b2, emsize, n_out)
    out = jax.block_until_ready(out)

    # Pure-JAX reference check (same semantics as the PyTorch forward).
    xm = x.mean(axis=0)
    ref = (jnp.maximum(xm @ w1 + b1, 0.0) @ w2 + b2).reshape(-1, emsize + 1, n_out)
    assert out.shape == (batch, emsize + 1, n_out), out.shape
    assert jnp.allclose(out, ref, atol=1e-4, rtol=1e-4), "mismatch vs reference"

    print("KERNEL_OK")
</pallas_src>

<mosaic_0001>
module attributes {stable_mosaic.version = 11 : i64} {
  func.func @decoder_kernel(%arg0: i32, %arg1: i32, %arg2: memref<2x8x128xf32, #tpu.memory_space<vmem>>, %arg3: memref<128x64xf32, #tpu.memory_space<vmem>>, %arg4: memref<1x64xf32, #tpu.memory_space<vmem>>, %arg5: memref<64x384xf32, #tpu.memory_space<vmem>>, %arg6: memref<1x384xf32, #tpu.memory_space<vmem>>, %arg7: memref<8x384xf32, #tpu.memory_space<vmem>>, %arg8: memref<8x128xf32, #tpu.memory_space<vmem>>) attributes {dimension_semantics = [#tpu.dimension_semantics<parallel>, #tpu.dimension_semantics<arbitrary>], iteration_bounds = array<i64: 1, 1>, scalar_prefetch = 0 : i64, scratch_operands = 1 : i64, tpu.core_type = #tpu.core_type<tc>, window_params = [{pipeline_mode = #tpu.pipeline_mode<double_buffered>, transform_indices = @transform_0, window_bounds = array<i64: 2, 8, 128>}, {pipeline_mode = #tpu.pipeline_mode<synchronous>, transform_indices = @transform_1, window_bounds = array<i64: 128, 64>}, {pipeline_mode = #tpu.pipeline_mode<synchronous>, transform_indices = @transform_2, window_bounds = array<i64: 1, 64>}, {pipeline_mode = #tpu.pipeline_mode<synchronous>, transform_indices = @transform_3, window_bounds = array<i64: 64, 384>}, {pipeline_mode = #tpu.pipeline_mode<synchronous>, transform_indices = @transform_4, window_bounds = array<i64: 1, 384>}, {transform_indices = @transform_5, window_bounds = array<i64: 8, 384>}]} {
    %c0_i32 = arith.constant 0 : i32
    %0 = arith.cmpi eq, %arg1, %c0_i32 : i32
    %1 = arith.extui %0 : i1 to i32
    %c0_i32_0 = arith.constant 0 : i32
    %2 = arith.cmpi ne, %1, %c0_i32_0 : i32
    scf.if %2 {
      %cst_9 = arith.constant 0.000000e+00 : f32
      %11 = vector.broadcast %cst_9 : f32 to vector<8x128xf32>
      %c0_10 = arith.constant 0 : index
      %c0_11 = arith.constant 0 : index
      %12 = vector.load %arg8[%c0_10, %c0_11] : memref<8x128xf32, #tpu.memory_space<vmem>>, vector<8x128xf32>
      tpu.vector_store %arg8[%c0_10, %c0_11], %11 {strides = array<i32>} : memref<8x128xf32, #tpu.memory_space<vmem>>, vector<8x128xf32>,
    } else {
    }
    %c0 = arith.constant 0 : index
    %c0_1 = arith.constant 0 : index
    %3 = vector.load %arg8[%c0, %c0_1] : memref<8x128xf32, #tpu.memory_space<vmem>>, vector<8x128xf32>
    %c0_2 = arith.constant 0 : index
    %c0_3 = arith.constant 0 : index
    %c0_4 = arith.constant 0 : index
    %4 = vector.load %arg2[%c0_2, %c0_3, %c0_4] : memref<2x8x128xf32, #tpu.memory_space<vmem>>, vector<2x8x128xf32>
    %cst = arith.constant dense<0.000000e+00> : vector<8x128xf32>
    %5 = vector.multi_reduction <add>, %4, %cst [0] : vector<2x8x128xf32> to vector<8x128xf32>
    %6 = arith.addf %3, %5 : vector<8x128xf32>
    %c0_5 = arith.constant 0 : index
    %c0_6 = arith.constant 0 : index
    %7 = vector.load %arg8[%c0_5, %c0_6] : memref<8x128xf32, #tpu.memory_space<vmem>>, vector<8x128xf32>
    tpu.vector_store %arg8[%c0_5, %c0_6], %6 {strides = array<i32>} : memref<8x128xf32, #tpu.memory_space<vmem>>, vector<8x128xf32>,
    %c0_i32_7 = arith.constant 0 : i32
    %8 = arith.cmpi eq, %arg1, %c0_i32_7 : i32
    %9 = arith.extui %8 : i1 to i32
    %c0_i32_8 = arith.constant 0 : i32
    %10 = arith.cmpi ne, %9, %c0_i32_8 : i32
    scf.if %10 {
      %c0_9 = arith.constant 0 : index
      %c0_10 = arith.constant 0 : index
      %11 = vector.load %arg8[%c0_9, %c0_10] : memref<8x128xf32, #tpu.memory_space<vmem>>, vector<8x128xf32>
      %cst_11 = arith.constant 1.250000e-01 : f32
      %12 = vector.broadcast %cst_11 : f32 to vector<8x128xf32>
      %13 = arith.mulf %11, %12 : vector<8x128xf32>
      %c0_12 = arith.constant 0 : index
      %c0_13 = arith.constant 0 : index
      %14 = vector.load %arg3[%c0_12, %c0_13] : memref<128x64xf32, #tpu.memory_space<vmem>>, vector<128x64xf32>
      %cst_14 = arith.constant dense<0.000000e+00> : vector<8x64xf32>
      %15 = tpu.matmul %13, %14, %cst_14 {dimension_numbers = #tpu.dot_dimension_numbers<[1], [0], [0], [1], [0, 0, 1, 1], [], []>} : vector<8x128xf32>, vector<128x64xf32>, vector<8x64xf32> -> vector<8x64xf32>
      %c0_15 = arith.constant 0 : index
      %c0_16 = arith.constant 0 : index
      %16 = vector.load %arg4[%c0_15, %c0_16] : memref<1x64xf32, #tpu.memory_space<vmem>>, vector<1x64xf32>
      %17 = vector.broadcast %16 : vector<1x64xf32> to vector<8x64xf32>
      %18 = arith.addf %15, %17 : vector<8x64xf32>
      %cst_17 = arith.constant 0.000000e+00 : f32
      %19 = vector.broadcast %cst_17 : f32 to vector<8x64xf32>
      %20 = arith.maximumf %18, %19 : vector<8x64xf32>
      %c0_18 = arith.constant 0 : index
      %c0_19 = arith.constant 0 : index
      %21 = vector.load %arg5[%c0_18, %c0_19] : memref<64x384xf32, #tpu.memory_space<vmem>>, vector<64x384xf32>
      %cst_20 = arith.constant dense<0.000000e+00> : vector<8x384xf32>
      %22 = tpu.matmul %20, %21, %cst_20 {dimension_numbers = #tpu.dot_dimension_numbers<[1], [0], [0], [1], [0, 0, 1, 1], [], []>} : vector<8x64xf32>, vector<64x384xf32>, vector<8x384xf32> -> vector<8x384xf32>
      %c0_21 = arith.constant 0 : index
      %c0_22 = arith.constant 0 : index
      %23 = vector.load %arg6[%c0_21, %c0_22] : memref<1x384xf32, #tpu.memory_space<vmem>>, vector<1x384xf32>
      %24 = vector.broadcast %23 : vector<1x384xf32> to vector<8x384xf32>
      %25 = arith.addf %22, %24 : vector<8x384xf32>
      %c0_23 = arith.constant 0 : index
      %c0_24 = arith.constant 0 : index
      %26 = vector.load %arg7[%c0_23, %c0_24] : memref<8x384xf32, #tpu.memory_space<vmem>>, vector<8x384xf32>
      tpu.vector_store %arg7[%c0_23, %c0_24], %25 {strides = array<i32>} : memref<8x384xf32, #tpu.memory_space<vmem>>, vector<8x384xf32>,
    } else {
    }
    return
  }
  func.func @transform_0(%arg0: i32, %arg1: i32) -> (i32, i32, i32) {
    %c0_i32 = arith.constant 0 : i32
    %c0_i32_0 = arith.constant 0 : i32
    return %arg1, %arg0, %c0_i32 : i32, i32, i32
  }
  func.func @transform_1(%arg0: i32, %arg1: i32) -> (i32, i32) {
    %c0_i32 = arith.constant 0 : i32
    %c0_i32_0 = arith.constant 0 : i32
    %c0_i32_1 = arith.constant 0 : i32
    return %c0_i32, %c0_i32_0 : i32, i32
  }
  func.func @transform_2(%arg0: i32, %arg1: i32) -> (i32, i32) {
    %c0_i32 = arith.constant 0 : i32
    %c0_i32_0 = arith.constant 0 : i32
    %c0_i32_1 = arith.constant 0 : i32
    return %c0_i32, %c0_i32_0 : i32, i32
  }
  func.func @transform_3(%arg0: i32, %arg1: i32) -> (i32, i32) {
    %c0_i32 = arith.constant 0 : i32
    %c0_i32_0 = arith.constant 0 : i32
    %c0_i32_1 = arith.constant 0 : i32
    return %c0_i32, %c0_i32_0 : i32, i32
  }
  func.func @transform_4(%arg0: i32, %arg1: i32) -> (i32, i32) {
    %c0_i32 = arith.constant 0 : i32
    %c0_i32_0 = arith.constant 0 : i32
    %c0_i32_1 = arith.constant 0 : i32
    return %c0_i32, %c0_i32_0 : i32, i32
  }
  func.func @transform_5(%arg0: i32, %arg1: i32) -> (i32, i32) {
    %c0_i32 = arith.constant 0 : i32
    %c0_i32_0 = arith.constant 0 : i32
    return %arg0, %c0_i32 : i32, i32
  }
}

</mosaic_0001>

<bundles_post_ra>
// kernel: tpu_custom_call.1
= control target key start
LH: loop header
LB: loop body
LE: loop exit
PB: predicated region body
PF: predicated region fallthrough
CT: control target
= control target key end

     0   :  { %10 = vsyncpa [#allocation4], 0  ;;  %s681_s0 = inlined_call_operand.hbm [shape: f32[2,8,128], index: 0, kind: input, shape index: {}]   ;;  %s682_s1 = inlined_call_operand.vmem [shape: f32[128,64], index: 1, kind: input, shape index: {}]   ;;  %s683_s2 = inlined_call_operand.vmem [shape: f32[1,64], index: 2, kind: input, shape index: {}]   ;;  %s684_s3 = inlined_call_operand.vmem [shape: f32[64,384], index: 3, kind: input, shape index: {}]   ;;  %s685_s4 = inlined_call_operand.vmem [shape: f32[1,384], index: 4, kind: input, shape index: {}]   ;;  %s686_s5 = inlined_call_operand.hbm [shape: f32[8,384], index: 5, kind: output, shape index: {}]  }
   0x1   :  { %11 = vsyncpa [#allocation5], 0  ;;  %s482_s18 = smov [#allocation3]  }
   0x2   :  { %s17_s19 = sshll.u32 %s482_s18, 4  ;;  %s18_s19 = int_to_ptr.vmem [resolvable:$true] %s17_s19 }
   0x3   :  { %s446_s20 = scalar_lea.vmem %s18_s19, 256  ;;  %p451_p1 = scmp.lt.s32.totalorder %s18_s19, %s18_s19 }
   0x4   :  { %p447_p0 = scmp.ne.s32.totalorder %s18_s19, %s446_s20  ;;  %p452_p2 = scmp.lt.s32.totalorder %s446_s20, %s446_s20 }
   0x6   :  { %p453_p3 = por %p452_p2, %p451_p1 }
   0x8   :  { %p454_p4 = pnand %p453_p3, %p447_p0 }
   0xa   :  { %457 = shalt.err (!%p454_p4)
}
   0xb   :  { %s483_s21 = smov 128   ;;  %s484_s22 = smov 8  }
   0xc   :  { %23 = dma.hbm_to_vmem [thread:$0]  %s681_s0, 256, %s18_s19, [#allocation4], %s483_s21, %s483_s21, %s484_s22  }
   0xd   :  { %478 = dma.done.wait [#allocation4], 256  }
   0xe   :  { %479 = vsyncadd [#allocation4], 4294967040  ;;  %v485_v0 = vmov 0.0   ;;  %vm486_vm0 = vmmov 0   ;;  %v66_v1 = vld [vmem:[%s682_s1 + $0x78] sm:$0xff]  ;;  %v65_v2 = vld [vmem:[%s682_s1 + $0x70] sm:$0xff]  ;;  %v171_v50 = vlaneseq }
   0xf   :  { %378 = vmatprep.subr.mxu0 %v485_v0  ;;  %410 = vmatprep.mubr.msk.f32.mxu0 %vm486_vm0, %v485_v0  ;;  %v64_v3 = vld [vmem:[%s682_s1 + $0x68] sm:$0xff]  ;;  %v63_v4 = vld [vmem:[%s682_s1 + $0x60] sm:$0xff]  ;;  %v62_v5 = vld [vmem:[%s682_s1 + $0x58] sm:$0xff]  ;;  %vm186_vm1 = vcmask 523264  }
  0x10   :  { %254 = vmatprep.mubr.f32.mxu1 %v485_v0  ;;  %379 = vmatpush3.msra.mxu0 %v66_v1  ;;  %v167_v6 = vld [vmem:[%s684_s3 + $0xb0] sm:$0xff]  ;;  %v166_v7 = vld [vmem:[%s684_s3 + $0xa8] sm:$0xff]  ;;  %v164_v8 = vld [vmem:[%s684_s3 + $0x98] sm:$0xff]  ;;  %v172_v51 = vshrl.u32 %v171_v50, 7 }
  0x11   :  { %380 = vmatprep.subr.mxu0 %v485_v0  ;;  %206 = vmatprep.subr.mxu1 %v167_v6  ;;  %v163_v9 = vld [vmem:[%s684_s3 + $0x90] sm:$0xff]  ;;  %v161_v11 = vld [vmem:[%s684_s3 + $0x80] sm:$0xff]  ;;  %v160_v12 = vld [vmem:[%s684_s3 + $0x78] sm:$0xff] }
  0x12   :  { %381 = vmatpush3.msra.mxu0 %v65_v2  ;;  %v61_v10 = vld [vmem:[%s682_s1 + $0x50] sm:$0xff]  ;;  %207 = vmatpush1.msra.mxu1 %v166_v7  ;;  %v60_v13 = vld [vmem:[%s682_s1 + $0x48] sm:$0xff]  ;;  %v157_v15 = vld [vmem:[%s684_s3 + $0x60] sm:$0xff]  ;;  %v173_v52 = vsub.s32 0, %v172_v51  ;;  %v177_v54 = vsub.s32 1, %v172_v51  ;;  %v181_v61 = vsub.s32 2, %v172_v51 }
  0x13   :  { %382 = vmatprep.subr.mxu0 %v485_v0  ;;  %208 = vmatprep.subr.mxu1 %v164_v8  ;;  %v158_v14 = vld [vmem:[%s684_s3 + $0x68] sm:$0xff]  ;;  %v59_v16 = vld [vmem:[%s682_s1 + $0x40] sm:$0xff]  ;;  %v155_v17 = vld [vmem:[%s684_s3 + $0x50] sm:$0xff] }
  0x14   :  { %383 = vmatpush3.msra.mxu0 %v64_v3  ;;  %209 = vmatpush1.msra.mxu1 %v163_v9  ;;  %v154_v18 = vld [vmem:[%s684_s3 + $0x48] sm:$0xff]  ;;  %v58_v19 = vld [vmem:[%s682_s1 + $0x38] sm:$0xff]  ;;  %v151_v21 = vld [vmem:[%s684_s3 + $0x30] sm:$0xff] }
  0x15   :  { %384 = vmatprep.subr.mxu0 %v485_v0  ;;  %210 = vmatprep.subr.mxu1 %v161_v11  ;;  %v152_v20 = vld [vmem:[%s684_s3 + $0x38] sm:$0xff]  ;;  %v57_v22 = vld [vmem:[%s682_s1 + $0x30] sm:$0xff]  ;;  %v56_v23 = vld [vmem:[%s682_s1 + $0x28] sm:$0xff] }
  0x16   :  { %385 = vmatpush3.msra.mxu0 %v63_v4  ;;  %211 = vmatpush1.msra.mxu1 %v160_v12  ;;  %v55_v24 = vld [vmem:[%s682_s1 + $0x20] sm:$0xff]  ;;  %v42_v26 = vld [vmem:[#allocation3 + $0x8] sm:$0xff]  ;;  %v54_v27 = vld [vmem:[%s682_s1 + $0x18] sm:$0xff] }
  0x17   :  { %386 = vmatprep.subr.mxu0 %v485_v0  ;;  %212 = vmatprep.subr.mxu1 %v158_v14  ;;  %v41_v25 = vld [vmem:[#allocation3] sm:$0xff]  ;;  %v53_v28 = vld [vmem:[%s682_s1 + $0x10] sm:$0xff]  ;;  %v52_v30 = vld [vmem:[%s682_s1 + $0x8] sm:$0xff] }
  0x18   :  { %387 = vmatpush3.msra.mxu0 %v62_v5  ;;  %213 = vmatpush1.msra.mxu1 %v157_v15  ;;  %v43_v29 = vadd.f32 %v42_v26, %v41_v25  ;;  %v51_v31 = vld [vmem:[%s682_s1] sm:$0xff]  ;;  %v148_v34 = vld [vmem:[%s684_s3 + $0x18] sm:$0xff]  ;;  %v146_v35 = vld [vmem:[%s684_s3 + $0x8] sm:$0xff] }
  0x19   :  { %388 = vmatprep.subr.mxu0 %v485_v0  ;;  %214 = vmatprep.subr.mxu1 %v155_v17  ;;  %v149_v33 = vld [vmem:[%s684_s3 + $0x20] sm:$0xff]  ;;  %v168_v42 = vld [vmem:[%s684_s3 + $0xb8] sm:$0xff]  ;;  %v162_v44 = vld [vmem:[%s684_s3 + $0x88] sm:$0xff] }
  0x1a   :  { %389 = vmatpush3.msra.mxu0 %v61_v10  ;;  %215 = vmatpush1.msra.mxu1 %v154_v18  ;;  %v50_v32 = vmul.f32 0.125, %v43_v29  ;;  %v145_v36 = vld [vmem:[%s684_s3] sm:$0xff]  ;;  %v159_v45 = vld [vmem:[%s684_s3 + $0x70] sm:$0xff]  ;;  %v156_v46 = vld [vmem:[%s684_s3 + $0x58] sm:$0xff] }
  0x1b   :  { %390 = vmatprep.subr.mxu0 %v485_v0  ;;  %216 = vmatprep.subr.mxu1 %v152_v20  ;;  %v349_v37 = vld [vmem:[%s683_s2] ss:$0 sm:$0xff]  ;;  %v150_v48 = vld [vmem:[%s684_s3 + $0x28] sm:$0xff]  ;;  %v147_v49 = vld [vmem:[%s684_s3 + $0x10] sm:$0xff] }
  0x1c   :  { %391 = vmatpush3.msra.mxu0 %v60_v13  ;;  %217 = vmatpush1.msra.mxu1 %v151_v21  ;;  %v165_v43 = vld [vmem:[%s684_s3 + $0xa0] sm:$0xff] }
  0x1d   :  { %392 = vmatprep.subr.mxu0 %v485_v0  ;;  %218 = vmatprep.subr.mxu1 %v149_v33  ;;  %v153_v47 = vld [vmem:[%s684_s3 + $0x40] sm:$0xff]  ;;  %s487_s3 = smov [#allocation6]  }
  0x1e   :  { %393 = vmatpush3.msra.mxu0 %v59_v16  ;;  %219 = vmatpush1.msra.mxu1 %v148_v34  ;;  %v169_v53 = vld [vmem:[%s685_s4] sm:$0x7]  ;;  %s340_s0 = sshll.u32 %s487_s3, 4  ;;  %s341_s0 = int_to_ptr.vmem [resolvable:$true] %s340_s0 }
  0x1f   :  { %394 = vmatprep.subr.mxu0 %v485_v0  ;;  %220 = vmatprep.subr.mxu1 %v146_v35  ;;  %v174_v55 = vrot.slane %v169_v53, %v173_v52  ;;  %v178_v56 = vrot.slane %v169_v53, %v177_v54  ;;  %v182_v62 = vrot.slane %v169_v53, %v181_v61  ;;  %s458_s29 = scalar_lea.vmem %s341_s0, 384  ;;  %p463_p6 = scmp.lt.s32.totalorder %s341_s0, %s341_s0 }
  0x20   :  { %395 = vmatpush3.msra.mxu0 %v58_v19  ;;  %221 = vmatpush1.msra.mxu1 %v145_v36  ;;  %p459_p5 = scmp.ne.s32.totalorder %s341_s0, %s458_s29  ;;  %p464_p7 = scmp.lt.s32.totalorder %s458_s29, %s458_s29 }
  0x21   :  { %396 = vmatprep.subr.mxu0 %v485_v0  ;;  %413 = vmatprep.subr.mxu1 %v485_v0 }
  0x22   :  { %397 = vmatpush3.msra.mxu0 %v57_v22  ;;  %p465_p8 = por %p464_p7, %p463_p6 }
  0x23   :  { %398 = vmatprep.subr.mxu0 %v485_v0 }
  0x24   :  { %399 = vmatpush3.msra.mxu0 %v56_v23  ;;  %p466_p9 = pnand %p465_p8, %p459_p5 }
  0x25   :  { %400 = vmatprep.subr.mxu0 %v485_v0 }
  0x26   :  { %401 = vmatpush3.msra.mxu0 %v55_v24 }
  0x27   :  { %402 = vmatprep.subr.mxu0 %v485_v0 }
  0x28   :  { %403 = vmatpush3.msra.mxu0 %v54_v27 }
  0x29   :  { %404 = vmatprep.subr.mxu0 %v485_v0 }
  0x2a   :  { %405 = vmatpush3.msra.mxu0 %v53_v28 }
  0x2b   :  { %406 = vmatprep.subr.mxu0 %v485_v0 }
  0x2c   :  { %407 = vmatpush3.msra.mxu0 %v52_v30 }
  0x2d   :  { %408 = vmatprep.subr.mxu0 %v485_v0 }
  0x2e   :  { %409 = vmatpush3.msra.mxu0 %v51_v31 }
  0x2f   :  { %411 = vmatmul.mubr.f32.vlgmr.msra.gmra.mxu0 %v50_v32 }
  0xef   :  { %v140_v38 = vpop.f32.mrf.mxu0 }
  0xf0   :  { %v141_v39 = vadd.f32 %v349_v37, %v140_v38 }
  0xf1   :  { %v412_v40 = vpop.f32.mrf.mxu0 }
  0xf2   :  { %v144_v41 = vmax.f32 %v141_v39, 0.0 }
  0xf4   :  { %350 = vmatmul.mubr.msk.f32.vlgmr.msra.gmra.mxu1 %vm186_vm1, %v144_v41 }
  0xf5   :  { %414 = vmatpush3.msra.mxu1 %v168_v42  ;;  %429 = vmatprep.mubr.msk.f32.mxu1 %vm486_vm0, %v485_v0 }
  0xf6   :  { %415 = vmatprep.subr.mxu1 %v485_v0 }
  0xf7   :  { %416 = vmatpush3.msra.mxu1 %v165_v43 }
  0xf8   :  { %417 = vmatprep.subr.mxu1 %v485_v0 }
  0xf9   :  { %418 = vmatpush3.msra.mxu1 %v162_v44 }
  0xfa   :  { %419 = vmatprep.subr.mxu1 %v485_v0 }
  0xfb   :  { %420 = vmatpush3.msra.mxu1 %v159_v45 }
  0xfc   :  { %421 = vmatprep.subr.mxu1 %v485_v0 }
  0xfd   :  { %422 = vmatpush3.msra.mxu1 %v156_v46 }
  0xfe   :  { %423 = vmatprep.subr.mxu1 %v485_v0 }
  0xff   :  { %424 = vmatpush3.msra.mxu1 %v153_v47 }
 0x100   :  { %425 = vmatprep.subr.mxu1 %v485_v0 }
 0x101   :  { %426 = vmatpush3.msra.mxu1 %v150_v48 }
 0x102   :  { %427 = vmatprep.subr.mxu1 %v485_v0 }
 0x103   :  { %428 = vmatpush3.msra.mxu1 %v147_v49 }
 0x104   :  { %430 = vmatmul.mubr.msk.f32.vlgmr.msra.gmra.mxu1 %vm186_vm1, %v144_v41 }
 0x1b4   :  { %v256_v57 = vpop.f32.mrf.mxu1 }
 0x1b5   :  { %v257_v58 = vadd.f32 %v256_v57, %v174_v55 }
 0x1b6   :  { %v258_v59 = vpop.f32.mrf.mxu1 }
 0x1b7   :  { %331 = vst [vmem:[#allocation6] sm:$0xff] %v257_v58  ;;  %v259_v60 = vadd.f32 %v258_v59, %v178_v56 }
 0x1b9   :  { %332 = vst [vmem:[#allocation6 + $0x8] sm:$0xff] %v259_v60 }
 0x1c4   :  { %v327_v63 = vpop.f32.mrf.mxu1 }
 0x1c5   :  { %v328_v0 = vadd.f32 %v327_v63, %v182_v62 }
 0x1c6   :  { %v431_v1 = vpop.f32.mrf.mxu1 }
 0x1c7   :  { %333 = vst [vmem:[#allocation6 + $0x10] sm:$0xff] %v328_v0 }
 0x1c8   :  { %469 = shalt.err (!%p466_p9)
}
 0x1c9   :  { %343 = dma.vmem_to_hbm [thread:$0]  %s341_s0, 384, %s686_s5, [#allocation5]  }
 0x1ca   :  { %480 = dma.done.wait [#allocation5], 384  }
 0x1cb   :  { %481 = vsyncadd [#allocation5], 4294966912 }
 0x1cc   :  { %347 = vsyncpa [#allocation4], 1 }
 0x1cd   :  { %348 = vsyncpa [#allocation5], 1 }

</bundles_post_ra>
